<compile_context>
chip_gen: v7x
topology: tpu7x:2x2x1
jax: 0.10.0
libtpu: 0.0.40
codegen_flags: <defaults>
</compile_context>

<pallas_src>
import math

import jax
import jax.numpy as jnp
from jax.experimental import pallas as pl
from jax.experimental.pallas import tpu as pltpu


_INV_SQRT2 = 1.0 / math.sqrt(2.0)


def _gelu_exact(x):
    # exact erf-based GELU, matching torch.nn.functional.gelu default
    return 0.5 * x * (1.0 + jax.lax.erf(x * _INV_SQRT2))


# ---------------------------------------------------------------------------
# Fused kernel: several "output groups" share the same row tiling.
# Per group g the kernel writes the flattened row
#   out_g[n, :] = [ gelu(emb_g[n, :]),
#                   x_g[n,0]*vec_g[0,:]+bias_g[0,:],
#                   x_g[n,1]*vec_g[1,:]+bias_g[1,:], ... ]
# assembled in registers and stored with a single full-width write.
# ---------------------------------------------------------------------------
def _make_fused_kernel(layout):
    """layout: tuple of (has_emb: bool, n_cont: int) per output group."""
    n_in = sum((1 if he else 0) + (3 if nc else 0) for he, nc in layout)

    def kernel(*refs):
        in_refs, out_refs = refs[:n_in], refs[n_in:]
        p = 0
        for (has_emb, n_cont), o_ref in zip(layout, out_refs):
            parts = []
            if has_emb:
                e = in_refs[p][...].astype(jnp.float32)          # (tn, E)
                p += 1
                parts.append(_gelu_exact(e))
            if n_cont:
                x = in_refs[p][...].astype(jnp.float32)          # (tn, Vc)
                vec = in_refs[p + 1][...]                        # (Vc, H) f32
                bias = in_refs[p + 2][...]                       # (Vc, H) f32
                p += 3
                for v in range(n_cont):                          # static unroll, Vc small
                    parts.append(x[:, v:v + 1] * vec[v:v + 1, :]
                                 + bias[v:v + 1, :])
            row = parts[0] if len(parts) == 1 else jnp.concatenate(parts, axis=-1)
            o_ref[...] = row                                     # one lane-dense store

    return kernel


def _choose_tile_rows(n_rows, bytes_per_row, *, budget_bytes=8 << 20, cap=2048):
    """Largest row tile that is a multiple of 8 dividing n_rows (or == n_rows),
    keeps one block-set under `budget_bytes` (so double-buffering fits in the
    32 MiB vmem limit we request), and keeps >=2 grid steps when cheap so both
    v7x TensorCores get work."""
    if n_rows < 8 or n_rows % 8 != 0:
        return n_rows                       # must equal the full dim
    t = min(cap, max(8, budget_bytes // max(1, bytes_per_row)))
    t = (t // 8) * 8
    if n_rows <= t:
        return n_rows // 2 if n_rows % 16 == 0 else n_rows
    for cand in range(t, 7, -8):
        if n_rows % cand == 0:
            return cand
    return 8


def _pad_rows(a, rows_padded):
    if a is None or a.shape[0] == rows_padded:
        return a
    pad = rows_padded - a.shape[0]
    return jnp.pad(a, ((0, pad),) + ((0, 0),) * (a.ndim - 1))


def fused_embed(groups, *, vmem_limit_bytes=32 * 1024 * 1024):
    """One pallas_call for several output groups sharing the same row count.

    groups: list of dicts with keys
      'emb'  : (N, E)  pre-gathered categorical embeddings (pre-GELU) or None
      'x'    : (N, Vc) continuous inputs or None
      'vec'  : (Vc, H) per-variable embedding vectors (if 'x' given)
      'bias' : (Vc, H) per-variable bias              (if 'x' given)
    Returns a list of float32 arrays of shape (N, E + Vc*H) per group.
    """
    rows = None
    metas = []
    bytes_per_row = 0
    for g in groups:
        emb, x = g.get("emb"), g.get("x")
        has_emb = emb is not None and emb.shape[-1] > 0
        n_cont = int(x.shape[-1]) if x is not None else 0
        e_width = int(emb.shape[-1]) if has_emb else 0
        hidden = int(g["vec"].shape[-1]) if n_cont else 0
        width = e_width + n_cont * hidden
        n = int(emb.shape[0]) if has_emb else int(x.shape[0])
        rows = n if rows is None else rows
        assert n == rows, "all groups must share the leading row count"
        metas.append((has_emb, n_cont, e_width, hidden, width))
        bytes_per_row += 4 * (e_width + n_cont + width)

    # pad rows to a multiple of 8 so large ragged N still gets a proper tiling
    rows_p = rows
    if rows > 8 and rows % 8 != 0:
        rows_p = ((rows + 7) // 8) * 8

    tn = _choose_tile_rows(rows_p, bytes_per_row)
    row_map = lambda i: (i, 0)
    const_map = lambda i: (0, 0)

    inputs, in_specs, out_shapes, out_specs, layout = [], [], [], [], []
    for g, (has_emb, n_cont, e_width, hidden, width) in zip(groups, metas):
        layout.append((has_emb, n_cont))
        if has_emb:
            inputs.append(_pad_rows(g["emb"], rows_p))
            in_specs.append(pl.BlockSpec((tn, e_width), row_map))
        if n_cont:
            inputs += [_pad_rows(g["x"], rows_p),
                       g["vec"].astype(jnp.float32),
                       g["bias"].astype(jnp.float32)]
            in_specs += [pl.BlockSpec((tn, n_cont), row_map),
                         pl.BlockSpec((n_cont, hidden), const_map),
                         pl.BlockSpec((n_cont, hidden), const_map)]
        out_shapes.append(jax.ShapeDtypeStruct((rows_p, width), jnp.float32))
        out_specs.append(pl.BlockSpec((tn, width), row_map))

    outs = pl.pallas_call(
        _make_fused_kernel(tuple(layout)),
        out_shape=tuple(out_shapes),
        grid_spec=pltpu.PrefetchScalarGridSpec(
            num_scalar_prefetch=0,
            grid=(rows_p // tn,),
            in_specs=in_specs,
            out_specs=tuple(out_specs)),
        compiler_params=pltpu.CompilerParams(
            dimension_semantics=("parallel",),
            vmem_limit_bytes=vmem_limit_bytes),
    )(*inputs)
    if not isinstance(outs, (list, tuple)):
        outs = (outs,)
    if rows_p != rows:
        outs = [o[:rows] for o in outs]
    return list(outs)


# ---------------------------------------------------------------------------
# Parameter init (deterministic, mirrors the PyTorch __init__ shapes)
# ---------------------------------------------------------------------------
def init_params(key, H, stat_input_size, multi_input_size, tgt_size,
                n_cat_stat, emb_size_stat, n_cat, emb_size):
    keys = jax.random.split(key, 3 + n_cat_stat + n_cat)

    def xavier_normal(k, size):
        std = math.sqrt(2.0 / (size + H))
        return std * jax.random.normal(k, (size, H), jnp.float32)

    return {
        "stat_vectors": xavier_normal(keys[0], stat_input_size),
        "stat_bias": jnp.zeros((stat_input_size, H), jnp.float32),
        "multi_vectors": xavier_normal(keys[1], multi_input_size),
        "multi_bias": jnp.zeros((multi_input_size, H), jnp.float32),
        "tgt_vectors": xavier_normal(keys[2], tgt_size),
        "tgt_bias": jnp.zeros((tgt_size, H), jnp.float32),
        # nn.Embedding default init: N(0, 1)
        "stat_emb_tables": [jax.random.normal(keys[3 + i],
                                              (emb_size_stat[i], H), jnp.float32)
                            for i in range(n_cat_stat)],
        "fut_emb_tables": [jax.random.normal(keys[3 + n_cat_stat + i],
                                             (emb_size[i], H), jnp.float32)
                           for i in range(n_cat)],
    }


# ---------------------------------------------------------------------------
# Forward (Pallas version): two fused launches
# ---------------------------------------------------------------------------
def tft_embedding_forward(params, target_inp, stat_exog, multi_exog,
                          n_cat_stat, n_cat):
    H = params["tgt_vectors"].shape[1]
    B, T, K = target_inp.shape
    S = stat_exog.shape[1]
    M = multi_exog.shape[2]
    Mc = M - n_cat

    # ---- launch 1: static exogenous (rows = B) -----------------------------
    # TODO(synk): the per-variable-vocab embedding gathers stay in XLA (ragged
    # tables have no clean BlockSpec form); GELU + concat happen in the kernel.
    stat_emb = None
    if n_cat_stat > 0:
        idx = stat_exog[:, :n_cat_stat].astype(jnp.int32)
        stat_emb = jnp.concatenate(
            [params["stat_emb_tables"][i][idx[:, i]] for i in range(n_cat_stat)],
            axis=-1)                                     # (B, n_cat_stat*H)
    (s_flat,) = fused_embed([{
        "emb": stat_emb,
        "x": stat_exog[:, n_cat_stat:],
        "vec": params["stat_vectors"][n_cat_stat:],
        "bias": params["stat_bias"][n_cat_stat:],
    }])
    s_inp = s_flat.reshape(B, S, H)

    # ---- launch 2: known-future exogenous + target (rows = B*T) ------------
    fut_emb = None
    if n_cat > 0:
        idx_m = multi_exog[:, :, :n_cat].astype(jnp.int32)
        fut_emb = jnp.concatenate(
            [params["fut_emb_tables"][i][idx_m[:, :, i]] for i in range(n_cat)],
            axis=-1).reshape(B * T, n_cat * H)
    # NOTE: reproduces the PyTorch indexing quirk cont_emb[self.n_categorical]:
    # a single (H,) vector row is shared by every continuous future variable.
    vec_row = params["multi_vectors"][n_cat]
    multi_group = {
        "emb": fut_emb,
        "x": multi_exog[:, :, n_cat:].reshape(B * T, Mc),
        "vec": jnp.broadcast_to(vec_row[None, :], (Mc, H)),
        "bias": params["multi_bias"][n_cat:],
    }
    tgt_group = {
        "emb": None,
        "x": target_inp.reshape(B * T, K),
        "vec": params["tgt_vectors"],
        "bias": params["tgt_bias"],
    }
    k_flat, t_flat = fused_embed([multi_group, tgt_group])
    k_inp = k_flat.reshape(B, T, M, H)
    tgt = t_flat.reshape(B, T, K, H)
    return s_inp, k_inp, tgt


# ---------------------------------------------------------------------------
# Pure-JAX reference (mirrors PyTorch semantics) for verification
# ---------------------------------------------------------------------------
def tft_embedding_ref(params, target_inp, stat_exog, multi_exog,
                      n_cat_stat, n_cat):
    cont = stat_exog[:, n_cat_stat:]
    ct = (cont[:, :, None] * params["stat_vectors"][n_cat_stat:][None]
          + params["stat_bias"][n_cat_stat:][None])
    cat_idx = stat_exog[:, :n_cat_stat].astype(jnp.int32)
    embs = jnp.stack([params["stat_emb_tables"][i][cat_idx[:, i]]
                      for i in range(n_cat_stat)], axis=1)
    embs = jax.nn.gelu(embs, approximate=False)
    s = jnp.concatenate([embs, ct], axis=1).astype(jnp.float32)

    cont_m = multi_exog[:, :, n_cat:]
    vec_row = params["multi_vectors"][n_cat]
    ctm = cont_m[..., None] * vec_row + params["multi_bias"][n_cat:]
    cat_idx_m = multi_exog[:, :, :n_cat].astype(jnp.int32)
    embm = jnp.stack([params["fut_emb_tables"][i][cat_idx_m[:, :, i]]
                      for i in range(n_cat)], axis=1)
    embm = jax.nn.gelu(embm, approximate=False)
    embm = jnp.transpose(embm, (0, 2, 1, 3))
    k = jnp.concatenate([embm, ctm], axis=2).astype(jnp.float32)

    t = target_inp[..., None] * params["tgt_vectors"] + params["tgt_bias"]
    return s, k, t


# ---------------------------------------------------------------------------
if __name__ == "__main__":
    H = 32
    B, T = 2, 8
    n_cat_stat, emb_size_stat = 2, [5, 7]
    n_cat, emb_size = 1, [6]
    stat_input_size = 4      # 2 categorical + 2 continuous
    multi_input_size = 3     # 1 categorical + 2 continuous
    tgt_size = 2

    key = jax.random.PRNGKey(0)
    k_par, k_in = jax.random.split(key)
    params = init_params(k_par, H, stat_input_size, multi_input_size, tgt_size,
                         n_cat_stat, emb_size_stat, n_cat, emb_size)

    ks = jax.random.split(k_in, 5)
    stat_cat = jax.random.randint(ks[0], (B, n_cat_stat), 0,
                                  min(emb_size_stat)).astype(jnp.float32)
    stat_cont = jax.random.normal(ks[1], (B, stat_input_size - n_cat_stat),
                                  jnp.float32)
    stat_exog = jnp.concatenate([stat_cat, stat_cont], axis=1)

    multi_cat = jax.random.randint(ks[2], (B, T, n_cat), 0,
                                   min(emb_size)).astype(jnp.float32)
    multi_cont = jax.random.normal(ks[3], (B, T, multi_input_size - n_cat),
                                   jnp.float32)
    multi_exog = jnp.concatenate([multi_cat, multi_cont], axis=2)

    target_inp = jax.random.normal(ks[4], (B, T, tgt_size), jnp.float32)

    s_inp, k_inp, t_inp = tft_embedding_forward(
        params, target_inp, stat_exog, multi_exog, n_cat_stat, n_cat)
    jax.block_until_ready((s_inp, k_inp, t_inp))

    assert s_inp.shape == (B, stat_input_size, H)
    assert k_inp.shape == (B, T, multi_input_size, H)
    assert t_inp.shape == (B, T, tgt_size, H)

    s_ref, k_ref, t_ref = tft_embedding_ref(
        params, target_inp, stat_exog, multi_exog, n_cat_stat, n_cat)
    for a, b in ((s_inp, s_ref), (k_inp, k_ref), (t_inp, t_ref)):
        assert jnp.allclose(a, b, atol=1e-5, rtol=1e-5)

    print("KERNEL_OK")
</pallas_src>

<mosaic_0001>
module attributes {stable_mosaic.version = 11 : i64} {
  func.func @kernel(%arg0: i32, %arg1: memref<2x64xf32, #tpu.memory_space<vmem>>, %arg2: memref<2x2xf32, #tpu.memory_space<vmem>>, %arg3: memref<2x32xf32, #tpu.memory_space<vmem>>, %arg4: memref<2x32xf32, #tpu.memory_space<vmem>>, %arg5: memref<2x128xf32, #tpu.memory_space<vmem>>) attributes {dimension_semantics = [#tpu.dimension_semantics<parallel>], iteration_bounds = array<i64: 1>, scalar_prefetch = 0 : i64, scratch_operands = 0 : i64, tpu.core_type = #tpu.core_type<tc>, window_params = [{transform_indices = @transform_0, window_bounds = array<i64: 2, 64>}, {transform_indices = @transform_1, window_bounds = array<i64: 2, 2>}, {pipeline_mode = #tpu.pipeline_mode<synchronous>, transform_indices = @transform_2, window_bounds = array<i64: 2, 32>}, {pipeline_mode = #tpu.pipeline_mode<synchronous>, transform_indices = @transform_3, window_bounds = array<i64: 2, 32>}, {transform_indices = @transform_4, window_bounds = array<i64: 2, 128>}]} {
    %c0 = arith.constant 0 : index
    %c0_0 = arith.constant 0 : index
    %0 = vector.load %arg1[%c0, %c0_0] : memref<2x64xf32, #tpu.memory_space<vmem>>, vector<2x64xf32>
    %cst = arith.constant 5.000000e-01 : f32
    %1 = vector.broadcast %cst : f32 to vector<2x64xf32>
    %2 = arith.mulf %1, %0 : vector<2x64xf32>
    %cst_1 = arith.constant 0.707106769 : f32
    %3 = vector.broadcast %cst_1 : f32 to vector<2x64xf32>
    %4 = arith.mulf %0, %3 : vector<2x64xf32>
    %5 = math.erf %4 : vector<2x64xf32>
    %cst_2 = arith.constant 1.000000e+00 : f32
    %6 = vector.broadcast %cst_2 : f32 to vector<2x64xf32>
    %7 = arith.addf %6, %5 : vector<2x64xf32>
    %8 = arith.mulf %2, %7 : vector<2x64xf32>
    %c0_3 = arith.constant 0 : index
    %c0_4 = arith.constant 0 : index
    %9 = vector.load %arg2[%c0_3, %c0_4] : memref<2x2xf32, #tpu.memory_space<vmem>>, vector<2x2xf32>
    %c0_5 = arith.constant 0 : index
    %c0_6 = arith.constant 0 : index
    %10 = vector.load %arg3[%c0_5, %c0_6] : memref<2x32xf32, #tpu.memory_space<vmem>>, vector<2x32xf32>
    %c0_7 = arith.constant 0 : index
    %c0_8 = arith.constant 0 : index
    %11 = vector.load %arg4[%c0_7, %c0_8] : memref<2x32xf32, #tpu.memory_space<vmem>>, vector<2x32xf32>
    %12 = vector.extract_strided_slice %9 {offsets = [0, 0], sizes = [2, 1], strides = [1, 1]} : vector<2x2xf32> to vector<2x1xf32>
    %13 = vector.extract_strided_slice %10 {offsets = [0, 0], sizes = [1, 32], strides = [1, 1]} : vector<2x32xf32> to vector<1x32xf32>
    %14 = vector.broadcast %12 : vector<2x1xf32> to vector<2x32xf32>
    %15 = vector.broadcast %13 : vector<1x32xf32> to vector<2x32xf32>
    %16 = arith.mulf %14, %15 : vector<2x32xf32>
    %17 = vector.extract_strided_slice %11 {offsets = [0, 0], sizes = [1, 32], strides = [1, 1]} : vector<2x32xf32> to vector<1x32xf32>
    %18 = vector.broadcast %17 : vector<1x32xf32> to vector<2x32xf32>
    %19 = arith.addf %16, %18 : vector<2x32xf32>
    %20 = vector.extract_strided_slice %9 {offsets = [0, 1], sizes = [2, 1], strides = [1, 1]} : vector<2x2xf32> to vector<2x1xf32>
    %21 = vector.extract_strided_slice %10 {offsets = [1, 0], sizes = [1, 32], strides = [1, 1]} : vector<2x32xf32> to vector<1x32xf32>
    %22 = vector.broadcast %20 : vector<2x1xf32> to vector<2x32xf32>
    %23 = vector.broadcast %21 : vector<1x32xf32> to vector<2x32xf32>
    %24 = arith.mulf %22, %23 : vector<2x32xf32>
    %25 = vector.extract_strided_slice %11 {offsets = [1, 0], sizes = [1, 32], strides = [1, 1]} : vector<2x32xf32> to vector<1x32xf32>
    %26 = vector.broadcast %25 : vector<1x32xf32> to vector<2x32xf32>
    %27 = arith.addf %24, %26 : vector<2x32xf32>
    %28 = tpu.concatenate %8, %19, %27 in 1 : vector<2x64xf32>, vector<2x32xf32>, vector<2x32xf32> -> vector<2x128xf32>
    %c0_9 = arith.constant 0 : index
    %c0_10 = arith.constant 0 : index
    %29 = vector.load %arg5[%c0_9, %c0_10] : memref<2x128xf32, #tpu.memory_space<vmem>>, vector<2x128xf32>
    tpu.vector_store %arg5[%c0_9, %c0_10], %28 {strides = array<i32>} : memref<2x128xf32, #tpu.memory_space<vmem>>, vector<2x128xf32>,
    return
  }
  func.func @transform_0(%arg0: i32) -> (i32, i32) {
    %c0_i32 = arith.constant 0 : i32
    %c0_i32_0 = arith.constant 0 : i32
    return %arg0, %c0_i32 : i32, i32
  }
  func.func @transform_1(%arg0: i32) -> (i32, i32) {
    %c0_i32 = arith.constant 0 : i32
    %c0_i32_0 = arith.constant 0 : i32
    return %arg0, %c0_i32 : i32, i32
  }
  func.func @transform_2(%arg0: i32) -> (i32, i32) {
    %c0_i32 = arith.constant 0 : i32
    %c0_i32_0 = arith.constant 0 : i32
    %c0_i32_1 = arith.constant 0 : i32
    return %c0_i32, %c0_i32_0 : i32, i32
  }
  func.func @transform_3(%arg0: i32) -> (i32, i32) {
    %c0_i32 = arith.constant 0 : i32
    %c0_i32_0 = arith.constant 0 : i32
    %c0_i32_1 = arith.constant 0 : i32
    return %c0_i32, %c0_i32_0 : i32, i32
  }
  func.func @transform_4(%arg0: i32) -> (i32, i32) {
    %c0_i32 = arith.constant 0 : i32
    %c0_i32_0 = arith.constant 0 : i32
    return %arg0, %c0_i32 : i32, i32
  }
}

</mosaic_0001>

<bundles_post_ra>
// kernel: tpu_custom_call.1
= control target key start
LH: loop header
LB: loop body
LE: loop exit
PB: predicated region body
PF: predicated region fallthrough
CT: control target
= control target key end

     0   :  { %9 = vsyncpa [#allocation3], 0  ;;  %s218_s0 = inlined_call_operand.hbm [shape: f32[2,64], index: 0, kind: input, shape index: {}]   ;;  %s219_s1 = inlined_call_operand.vmem [shape: f32[2,2], index: 1, kind: input, shape index: {}]   ;;  %s220_s2 = inlined_call_operand.vmem [shape: f32[2,32], index: 2, kind: input, shape index: {}]   ;;  %s221_s3 = inlined_call_operand.vmem [shape: f32[2,32], index: 3, kind: input, shape index: {}]   ;;  %s222_s4 = inlined_call_operand.hbm [shape: f32[2,128], index: 4, kind: output, shape index: {}]  }
   0x1   :  { %10 = vsyncpa [#allocation4], 0  ;;  %s154_s15 = smov [#allocation2]   ;;  %s106_s19 = scalar_lea.hbm %s218_s0, 32 }
   0x2   :  { %s17_s16 = sshll.u32 %s154_s15, 4  ;;  %p107_p0 = scmp.ne.s32.totalorder %s218_s0, %s106_s19  ;;  %s18_s16 = int_to_ptr.vmem [resolvable:$true] %s17_s16 }
   0x3   :  { %p110_p1 = scmp.lt.u32.totalorder %s106_s19, %s218_s0 }
   0x5   :  { %p112_p2 = pnand %p110_p1, %p107_p0 }
   0x7   :  { %115 = shalt.err (!%p112_p2)
}
   0x8   :  { %s116_s24 = scalar_lea.vmem %s18_s16, 32  ;;  %p121_p4 = scmp.lt.s32.totalorder %s18_s16, %s18_s16 }
   0x9   :  { %p117_p3 = scmp.ne.s32.totalorder %s18_s16, %s116_s24  ;;  %p122_p5 = scmp.lt.s32.totalorder %s116_s24, %s116_s24 }
   0xb   :  { %p123_p6 = por %p122_p5, %p121_p4 }
   0xd   :  { %p124_p7 = pnand %p123_p6, %p117_p3 }
   0xf   :  { %127 = shalt.err (!%p124_p7)
}
  0x10   :  { %20 = dma.hbm_to_vmem [thread:$0]  %s218_s0, 32, %s18_s16, [#allocation3]  }
  0x11   :  { %150 = dma.done.wait [#allocation3], 32  }
  0x12   :  { %151 = vsyncadd [#allocation3], 4294967264  ;;  %v155_v0 = vmov 0   ;;  %v36_v1 = vld [vmem:[%s219_s1] sm:$0x3]  ;;  %v156_v2 = vmov 1   ;;  %v44_v3 = vlaneseq }
  0x13   :  { %102 = vset.pattern.permute.xlu0 %v155_v0  ;;  %v37_v6 = vld [vmem:[%s220_s2] sm:$0x3]  ;;  %s157_s1 = smov 64   ;;  %s158_s6 = smov 96   ;;  %vm76_vm0 = vcmask 523264   ;;  %vm78_vm1 = vcmask 785408  }
  0x14   :  { %41 = vperm.xlu0 %102, %v36_v1   ;;  %v45_v4 = vshrl.u32 %v44_v3, 7  ;;  %v38_v7 = vld [vmem:[%s221_s3] sm:$0x3]  ;;  %s159_s2 = smov [#allocation5]  }
  0x15   :  { %v30_v19 = vld [vmem:[#allocation2] sm:$0x3]  ;;  %s87_s3 = sshll.u32 %s159_s2, 4  ;;  %s88_s3 = int_to_ptr.vmem [resolvable:$true] %s87_s3 }
  0x16   :  { %v46_v5 = vsub.s32 0, %v45_v4  ;;  %v60_v9 = vsub.s32 1, %v45_v4  ;;  %v32_v20 = vmul.f32 0.70710677, %v30_v19  ;;  %v31_v22 = vmul.f32 0.5, %v30_v19  ;;  %s128_s7 = scalar_lea.vmem %s88_s3, 32  ;;  %p133_p9 = scmp.lt.s32.totalorder %s88_s3, %s88_s3 }
  0x17   :  { %p129_p8 = scmp.ne.s32.totalorder %s88_s3, %s128_s7  ;;  %p134_p10 = scmp.lt.s32.totalorder %s128_s7, %s128_s7 }
  0x18   :  { %103 = vset.pattern.permute.xlu0 %v156_v2  ;;  %v47_v8 = vrot.slane %v37_v6, %v46_v5  ;;  %v52_v10 = vrot.slane %v38_v7, %v46_v5  ;;  %v61_v13 = vrot.slane %v37_v6, %v60_v9  ;;  %v66_v15 = vrot.slane %v38_v7, %v60_v9 }
  0x19   :  { %55 = vperm.xlu0 %103, %v36_v1   ;;  %104 = verf.f32 %v32_v20  ;;  %p135_p11 = por %p134_p10, %p133_p9 }
  0x1b   :  { %p136_p12 = pnand %p135_p11, %p129_p8 }
  0x23   :  { %v105_v21 = vpop.eup %104 }
  0x24   :  { %v34_v23 = vadd.f32 1.0, %v105_v21 }
  0x26   :  { %v35_v25 = vmul.f32 %v34_v23, %v31_v22 }
  0x93   :  { %v42_v11 = vpop.permute.xlu0 %41 }
  0x94   :  { %v48_v12 = vmul.f32 %v47_v8, %v42_v11 }
  0x96   :  { %v53_v14 = vadd.f32 %v52_v10, %v48_v12 }
  0x98   :  { %69 = vrot.lane.b32.xlu1 %v53_v14, %s157_s1  ;;  %v56_v16 = vpop.permute.xlu0 %55 }
  0x99   :  { %v62_v17 = vmul.f32 %v61_v13, %v56_v16 }
  0x9b   :  { %v67_v18 = vadd.f32 %v66_v15, %v62_v17 }
  0x9d   :  { %73 = vrot.lane.b32.xlu1 %v67_v18, %s158_s6 }
 0x10a   :  { %v70_v24 = vpop.permute.xlu1 %69 }
 0x10b   :  { %v77_v26 = vsel %vm76_vm0, %v35_v25, %v70_v24 }
 0x10f   :  { %v74_v27 = vpop.permute.xlu1 %73 }
 0x110   :  { %v79_v28 = vsel %vm78_vm1, %v77_v26, %v74_v27 }
 0x111   :  { %80 = vst [vmem:[#allocation5] sm:$0x3] %v79_v28 }
 0x112   :  { %139 = shalt.err (!%p136_p12)
}
 0x113   :  { %s140_s10 = scalar_lea.hbm %s222_s4, 32 }
 0x114   :  { %p141_p13 = scmp.ne.s32.totalorder %s222_s4, %s140_s10  ;;  %p144_p0 = scmp.lt.u32.totalorder %s140_s10, %s222_s4 }
 0x116   :  { %p146_p1 = pnand %p144_p0, %p141_p13 }
 0x118   :  { %149 = shalt.err (!%p146_p1)
}
 0x119   :  { %90 = dma.vmem_to_hbm [thread:$0]  %s88_s3, 32, %s222_s4, [#allocation4]  }
 0x11a   :  { %152 = dma.done.wait [#allocation4], 32  }
 0x11b   :  { %153 = vsyncadd [#allocation4], 4294967264 }
 0x11c   :  { %94 = vsyncpa [#allocation3], 1 }
 0x11d   :  { %95 = vsyncpa [#allocation4], 1 }

</bundles_post_ra>
